<compile_context>
chip_gen: v5e
topology: v5e:2x2
jax: 0.10.0
libtpu: 0.0.40
codegen_flags: <defaults>
</compile_context>

<pallas_src>
import jax
import jax.numpy as jnp
from jax.experimental import pallas as pl
from jax.experimental.pallas import tpu as pltpu

LANE = 128  # TPU lane width: keep the kernel's output lane-dense.


def _round_up(x, m):
    return ((x + m - 1) // m) * m


# ---------------------------------------------------------------------------
# Kernel: one batch tile through the fused twin MLP.
#   x_ref  : (TB, D)      bf16   streamed per grid step
#   w*_ref : bf16 weights        VMEM-resident across the grid
#   b*_ref : f32 biases          VMEM-resident across the grid
#   out_ref: (TB, 128)    f32    cols [0:O] = q1, [O:2O] = q2, rest zero-padded
# ---------------------------------------------------------------------------
def _twin_mlp_kernel(x_ref, w1_ref, b1_ref, w2_ref, b2_ref, w3_ref, b3_ref, out_ref):
    x = x_ref[...]
    h1 = jnp.dot(x, w1_ref[...], preferred_element_type=jnp.float32) + b1_ref[...]
    h1 = jnp.maximum(h1, 0.0)
    h2 = jnp.dot(h1.astype(jnp.bfloat16), w2_ref[...],
                 preferred_element_type=jnp.float32) + b2_ref[...]
    h2 = jnp.maximum(h2, 0.0)
    out = jnp.dot(h2.astype(jnp.bfloat16), w3_ref[...],
                  preferred_element_type=jnp.float32) + b3_ref[...]
    out_ref[...] = out


def _block_diag(a, b):
    out = jnp.zeros((a.shape[0] + b.shape[0], a.shape[1] + b.shape[1]), jnp.float32)
    return out.at[: a.shape[0], : a.shape[1]].set(a).at[a.shape[0]:, a.shape[1]:].set(b)


def _fuse_twin_params(params):
    """Fuse the two twin MLPs into one set of (concatenated / block-diag) weights."""
    net1, net2 = params
    (w1a, b1a), (w2a, b2a), (w3a, b3a) = net1
    (w1b, b1b), (w2b, b2b), (w3b, b3b) = net2
    out_dim = w3a.shape[1]

    w1f = jnp.concatenate([w1a, w1b], axis=1)            # [D, 2H]
    b1f = jnp.concatenate([b1a, b1b], axis=1)            # [1, 2H]
    w2f = _block_diag(w2a, w2b)                          # [2H, 2H]
    b2f = jnp.concatenate([b2a, b2b], axis=1)            # [1, 2H]

    w3bd = _block_diag(w3a, w3b)                         # [2H, 2*O]
    out_pad = _round_up(max(w3bd.shape[1], LANE), LANE)  # lane-dense output width
    w3f = jnp.zeros((w3bd.shape[0], out_pad), jnp.float32)
    w3f = w3f.at[:, : w3bd.shape[1]].set(w3bd)
    b3f = jnp.zeros((1, out_pad), jnp.float32)
    b3f = b3f.at[:, :out_dim].set(b3a).at[:, out_dim: 2 * out_dim].set(b3b)

    fused = (w1f.astype(jnp.bfloat16), b1f,
             w2f.astype(jnp.bfloat16), b2f,
             w3f.astype(jnp.bfloat16), b3f)
    return fused, out_dim


def _pick_batch_tile(B):
    """Large tiles amortize per-step overhead (~0.35us); >=2 tiles lets v7x's two
    TensorCores split the batch when it is big enough to pay for the extra step."""
    TB = min(512, _round_up(B, 8))
    if B >= 256:
        TB = min(TB, _round_up((B + 1) // 2, 8))
    return TB


def _twin_forward(states, fused, out_dim):
    w1f, b1f, w2f, b2f, w3f, b3f = fused
    B, D = states.shape
    H2 = w2f.shape[0]
    OUT = w3f.shape[1]

    TB = _pick_batch_tile(B)
    Bp = _round_up(B, TB)
    x = states
    if Bp != B:
        x = jnp.pad(x, ((0, Bp - B), (0, 0)))
    x = x.astype(jnp.bfloat16)

    # Generous VMEM limit with headroom (doubled-buffered x/out + resident weights).
    vmem_need = 2 * (TB * D * 2) + 2 * (TB * OUT * 4) \
        + (D * H2 + H2 * H2 + H2 * OUT) * 2 + 3 * (H2 * 4 + OUT * 4)
    vmem_limit = min(64 << 20, max(32 << 20, int(vmem_need * 1.5)))

    resident = lambda i: (0, 0)
    out = pl.pallas_call(
        _twin_mlp_kernel,
        out_shape=jax.ShapeDtypeStruct((Bp, OUT), jnp.float32),
        grid_spec=pltpu.PrefetchScalarGridSpec(
            num_scalar_prefetch=0,
            grid=(Bp // TB,),
            in_specs=[
                pl.BlockSpec((TB, D), lambda i: (i, 0)),   # x: streamed by batch tile
                pl.BlockSpec((D, H2), resident),           # W1 (concat of twins)
                pl.BlockSpec((1, H2), resident),           # b1
                pl.BlockSpec((H2, H2), resident),          # W2 (block-diag)
                pl.BlockSpec((1, H2), resident),           # b2
                pl.BlockSpec((H2, OUT), resident),         # W3 (block-diag, 128-wide)
                pl.BlockSpec((1, OUT), resident),          # b3
            ],
            out_specs=pl.BlockSpec((TB, OUT), lambda i: (i, 0)),
        ),
        compiler_params=pltpu.CompilerParams(
            dimension_semantics=("parallel",),             # batch axis -> both TCs on v7x
            vmem_limit_bytes=vmem_limit),
    )(x, w1f, b1f, w2f, b2f, w3f, b3f)

    q1 = out[:B, 0:out_dim]
    q2 = out[:B, out_dim: 2 * out_dim]
    return q1, q2


def he_linear_init(key, in_dim, out_dim):
    """Deterministic He (Kaiming) normal init, weight stored as [in, out]."""
    wkey, _ = jax.random.split(key)
    std = jnp.sqrt(2.0 / in_dim)
    w = jax.random.normal(wkey, (in_dim, out_dim), dtype=jnp.float32) * std
    b = jnp.zeros((1, out_dim), dtype=jnp.float32)
    return w, b


def make_twinned_params(key, input_dim, output_dim=1, hidden_units=(64, 64)):
    dims = (input_dim,) + tuple(hidden_units) + (output_dim,)
    keys = jax.random.split(key, 2 * (len(dims) - 1))
    nets = []
    k_iter = iter(keys)
    for _ in range(2):  # net1, net2
        layers = []
        for i in range(len(dims) - 1):
            layers.append(he_linear_init(next(k_iter), dims[i], dims[i + 1]))
        nets.append(tuple(layers))
    return tuple(nets)


@jax.jit
def twinned_state_function(states, params):
    """Equivalent of TwinnedStateFunction.forward: returns (q1, q2)."""
    fused, out_dim = _fuse_twin_params(params)
    return _twin_forward(states, fused, out_dim)


if __name__ == "__main__":
    key = jax.random.PRNGKey(0)
    pkey, xkey = jax.random.split(key)

    batch = 8
    input_dim = 32
    output_dim = 1
    hidden_units = (64, 64)

    params = make_twinned_params(pkey, input_dim, output_dim, hidden_units)
    states = jax.random.normal(xkey, (batch, input_dim), dtype=jnp.float32)

    q1, q2 = twinned_state_function(states, params)
    jax.block_until_ready((q1, q2))

    # Pure-JAX reference using the same bf16 matmul operands / f32 accumulation.
    def ref_mlp(x, net):
        (w1, b1), (w2, b2), (w3, b3) = net
        xb = x.astype(jnp.bfloat16)
        h = jnp.maximum(jnp.dot(xb, w1.astype(jnp.bfloat16),
                                preferred_element_type=jnp.float32) + b1, 0.0)
        h = jnp.maximum(jnp.dot(h.astype(jnp.bfloat16), w2.astype(jnp.bfloat16),
                                preferred_element_type=jnp.float32) + b2, 0.0)
        return jnp.dot(h.astype(jnp.bfloat16), w3.astype(jnp.bfloat16),
                       preferred_element_type=jnp.float32) + b3

    r1 = ref_mlp(states, params[0])
    r2 = ref_mlp(states, params[1])
    assert q1.shape == (batch, output_dim) and q2.shape == (batch, output_dim)
    assert jnp.allclose(q1, r1, atol=5e-3, rtol=5e-3)
    assert jnp.allclose(q2, r2, atol=5e-3, rtol=5e-3)

    print("KERNEL_OK")
</pallas_src>

<mosaic_0001>
module attributes {stable_mosaic.version = 11 : i64} {
  func.func @_twin_mlp_kernel(%arg0: i32, %arg1: memref<8x32xbf16, #tpu.memory_space<vmem>>, %arg2: memref<32x128xbf16, #tpu.memory_space<vmem>>, %arg3: memref<1x128xf32, #tpu.memory_space<vmem>>, %arg4: memref<128x128xbf16, #tpu.memory_space<vmem>>, %arg5: memref<1x128xf32, #tpu.memory_space<vmem>>, %arg6: memref<128x128xbf16, #tpu.memory_space<vmem>>, %arg7: memref<1x128xf32, #tpu.memory_space<vmem>>, %arg8: memref<8x128xf32, #tpu.memory_space<vmem>>) attributes {dimension_semantics = [#tpu.dimension_semantics<parallel>], iteration_bounds = array<i64: 1>, scalar_prefetch = 0 : i64, scratch_operands = 0 : i64, tpu.core_type = #tpu.core_type<tc>, window_params = [{transform_indices = @transform_0, window_bounds = array<i64: 8, 32>}, {pipeline_mode = #tpu.pipeline_mode<synchronous>, transform_indices = @transform_1, window_bounds = array<i64: 32, 128>}, {pipeline_mode = #tpu.pipeline_mode<synchronous>, transform_indices = @transform_2, window_bounds = array<i64: 1, 128>}, {pipeline_mode = #tpu.pipeline_mode<synchronous>, transform_indices = @transform_3, window_bounds = array<i64: 128, 128>}, {pipeline_mode = #tpu.pipeline_mode<synchronous>, transform_indices = @transform_4, window_bounds = array<i64: 1, 128>}, {pipeline_mode = #tpu.pipeline_mode<synchronous>, transform_indices = @transform_5, window_bounds = array<i64: 128, 128>}, {pipeline_mode = #tpu.pipeline_mode<synchronous>, transform_indices = @transform_6, window_bounds = array<i64: 1, 128>}, {transform_indices = @transform_7, window_bounds = array<i64: 8, 128>}]} {
    %c0 = arith.constant 0 : index
    %c0_0 = arith.constant 0 : index
    %0 = vector.load %arg1[%c0, %c0_0] : memref<8x32xbf16, #tpu.memory_space<vmem>>, vector<8x32xbf16>
    %c0_1 = arith.constant 0 : index
    %c0_2 = arith.constant 0 : index
    %1 = vector.load %arg2[%c0_1, %c0_2] : memref<32x128xbf16, #tpu.memory_space<vmem>>, vector<32x128xbf16>
    %cst = arith.constant dense<0.000000e+00> : vector<8x128xf32>
    %2 = tpu.matmul %0, %1, %cst {dimension_numbers = #tpu.dot_dimension_numbers<[1], [0], [0], [1], [0, 0, 1, 1], [], []>} : vector<8x32xbf16>, vector<32x128xbf16>, vector<8x128xf32> -> vector<8x128xf32>
    %c0_3 = arith.constant 0 : index
    %c0_4 = arith.constant 0 : index
    %3 = vector.load %arg3[%c0_3, %c0_4] : memref<1x128xf32, #tpu.memory_space<vmem>>, vector<1x128xf32>
    %4 = vector.broadcast %3 : vector<1x128xf32> to vector<8x128xf32>
    %5 = arith.addf %2, %4 : vector<8x128xf32>
    %cst_5 = arith.constant 0.000000e+00 : f32
    %6 = vector.broadcast %cst_5 : f32 to vector<8x128xf32>
    %7 = arith.maximumf %5, %6 : vector<8x128xf32>
    %8 = arith.truncf %7 : vector<8x128xf32> to vector<8x128xbf16>
    %c0_6 = arith.constant 0 : index
    %c0_7 = arith.constant 0 : index
    %9 = vector.load %arg4[%c0_6, %c0_7] : memref<128x128xbf16, #tpu.memory_space<vmem>>, vector<128x128xbf16>
    %cst_8 = arith.constant dense<0.000000e+00> : vector<8x128xf32>
    %10 = tpu.matmul %8, %9, %cst_8 {dimension_numbers = #tpu.dot_dimension_numbers<[1], [0], [0], [1], [0, 0, 1, 1], [], []>} : vector<8x128xbf16>, vector<128x128xbf16>, vector<8x128xf32> -> vector<8x128xf32>
    %c0_9 = arith.constant 0 : index
    %c0_10 = arith.constant 0 : index
    %11 = vector.load %arg5[%c0_9, %c0_10] : memref<1x128xf32, #tpu.memory_space<vmem>>, vector<1x128xf32>
    %12 = vector.broadcast %11 : vector<1x128xf32> to vector<8x128xf32>
    %13 = arith.addf %10, %12 : vector<8x128xf32>
    %cst_11 = arith.constant 0.000000e+00 : f32
    %14 = vector.broadcast %cst_11 : f32 to vector<8x128xf32>
    %15 = arith.maximumf %13, %14 : vector<8x128xf32>
    %16 = arith.truncf %15 : vector<8x128xf32> to vector<8x128xbf16>
    %c0_12 = arith.constant 0 : index
    %c0_13 = arith.constant 0 : index
    %17 = vector.load %arg6[%c0_12, %c0_13] : memref<128x128xbf16, #tpu.memory_space<vmem>>, vector<128x128xbf16>
    %cst_14 = arith.constant dense<0.000000e+00> : vector<8x128xf32>
    %18 = tpu.matmul %16, %17, %cst_14 {dimension_numbers = #tpu.dot_dimension_numbers<[1], [0], [0], [1], [0, 0, 1, 1], [], []>} : vector<8x128xbf16>, vector<128x128xbf16>, vector<8x128xf32> -> vector<8x128xf32>
    %c0_15 = arith.constant 0 : index
    %c0_16 = arith.constant 0 : index
    %19 = vector.load %arg7[%c0_15, %c0_16] : memref<1x128xf32, #tpu.memory_space<vmem>>, vector<1x128xf32>
    %20 = vector.broadcast %19 : vector<1x128xf32> to vector<8x128xf32>
    %21 = arith.addf %18, %20 : vector<8x128xf32>
    %c0_17 = arith.constant 0 : index
    %c0_18 = arith.constant 0 : index
    %22 = vector.load %arg8[%c0_17, %c0_18] : memref<8x128xf32, #tpu.memory_space<vmem>>, vector<8x128xf32>
    tpu.vector_store %arg8[%c0_17, %c0_18], %21 {strides = array<i32>} : memref<8x128xf32, #tpu.memory_space<vmem>>, vector<8x128xf32>,
    return
  }
  func.func @transform_0(%arg0: i32) -> (i32, i32) {
    %c0_i32 = arith.constant 0 : i32
    %c0_i32_0 = arith.constant 0 : i32
    return %arg0, %c0_i32 : i32, i32
  }
  func.func @transform_1(%arg0: i32) -> (i32, i32) {
    %c0_i32 = arith.constant 0 : i32
    %c0_i32_0 = arith.constant 0 : i32
    %c0_i32_1 = arith.constant 0 : i32
    return %c0_i32, %c0_i32_0 : i32, i32
  }
  func.func @transform_2(%arg0: i32) -> (i32, i32) {
    %c0_i32 = arith.constant 0 : i32
    %c0_i32_0 = arith.constant 0 : i32
    %c0_i32_1 = arith.constant 0 : i32
    return %c0_i32, %c0_i32_0 : i32, i32
  }
  func.func @transform_3(%arg0: i32) -> (i32, i32) {
    %c0_i32 = arith.constant 0 : i32
    %c0_i32_0 = arith.constant 0 : i32
    %c0_i32_1 = arith.constant 0 : i32
    return %c0_i32, %c0_i32_0 : i32, i32
  }
  func.func @transform_4(%arg0: i32) -> (i32, i32) {
    %c0_i32 = arith.constant 0 : i32
    %c0_i32_0 = arith.constant 0 : i32
    %c0_i32_1 = arith.constant 0 : i32
    return %c0_i32, %c0_i32_0 : i32, i32
  }
  func.func @transform_5(%arg0: i32) -> (i32, i32) {
    %c0_i32 = arith.constant 0 : i32
    %c0_i32_0 = arith.constant 0 : i32
    %c0_i32_1 = arith.constant 0 : i32
    return %c0_i32, %c0_i32_0 : i32, i32
  }
  func.func @transform_6(%arg0: i32) -> (i32, i32) {
    %c0_i32 = arith.constant 0 : i32
    %c0_i32_0 = arith.constant 0 : i32
    %c0_i32_1 = arith.constant 0 : i32
    return %c0_i32, %c0_i32_0 : i32, i32
  }
  func.func @transform_7(%arg0: i32) -> (i32, i32) {
    %c0_i32 = arith.constant 0 : i32
    %c0_i32_0 = arith.constant 0 : i32
    return %arg0, %c0_i32 : i32, i32
  }
}

</mosaic_0001>

<bundles_post_ra>
// kernel: twinned_state_function.1
= control target key start
LH: loop header
LB: loop body
LE: loop exit
PB: predicated region body
PF: predicated region fallthrough
CT: control target
= control target key end

     0   :  { %vm48_vm0 = vcmask 261120   ;;  %s439_s1 = inlined_call_operand.vmem [shape: bf16[32,128], index: 1, kind: input, shape index: {}]   ;;  %s440_s3 = inlined_call_operand.vmem [shape: bf16[128,128], index: 3, kind: input, shape index: {}]   ;;  %s441_s2 = inlined_call_operand.vmem [shape: f32[1,128], index: 2, kind: input, shape index: {}]   ;;  %s442_s0 = inlined_call_operand.vmem [shape: bf16[8,32], index: 0, kind: input, shape index: {}]   ;;  %s443_s4 = inlined_call_operand.vmem [shape: f32[1,128], index: 4, kind: input, shape index: {}]   ;;  %s444_s5 = inlined_call_operand.vmem [shape: bf16[128,128], index: 5, kind: input, shape index: {}]   ;;  %s445_s6 = inlined_call_operand.vmem [shape: f32[1,128], index: 6, kind: input, shape index: {}]   ;;  %s446_s7 = inlined_call_operand.vmem [shape: f32[8,128], index: 7, kind: output, shape index: {}]  }
   0x1   :  { %v310_v0 = vld [vmem:[%s439_s1 + $0x8] sm:$0xff]  ;;  %v318_v1 = vld [vmem:[%s440_s3 + $0x38] sm:$0xff]  ;;  %v309_v2 = vld [vmem:[%s439_s1] sm:$0xff] }
   0x2   :  { %58 = vmatpush.bf16.msra.mxu0 %v310_v0  ;;  %135 = vmatpush.bf16.msra.mxu1 %v318_v1  ;;  %v317_v3 = vld [vmem:[%s440_s3 + $0x30] sm:$0xff]  ;;  %v27_v4 = vld [vmem:[%s442_s0] sm:$0xf]  ;;  %v316_v5 = vld [vmem:[%s440_s3 + $0x28] sm:$0xff] }
   0x3   :  { %v315_v6 = vld [vmem:[%s440_s3 + $0x20] sm:$0xff]  ;;  %v314_v7 = vld [vmem:[%s440_s3 + $0x18] sm:$0xff]  ;;  %v313_v8 = vld [vmem:[%s440_s3 + $0x10] sm:$0xff] }
   0x4   :  { %v312_v9 = vld [vmem:[%s440_s3 + $0x8] sm:$0xff]  ;;  %v311_v10 = vld [vmem:[%s440_s3] sm:$0xff]  ;;  %v326_v11 = vld [vmem:[%s444_s5 + $0x38] sm:$0xff] }
   0x5   :  { %218 = vmatpush.bf16.msra.mxu2 %v326_v11  ;;  %v325_v12 = vld [vmem:[%s444_s5 + $0x30] sm:$0xff]  ;;  %v324_v13 = vld [vmem:[%s444_s5 + $0x28] sm:$0xff]  ;;  %v323_v14 = vld [vmem:[%s444_s5 + $0x20] sm:$0xff] }
   0x6   :  { %59 = vmatpush.bf16.msra.mxu0 %v309_v2  ;;  %136 = vmatpush.bf16.msra.mxu1 %v317_v3  ;;  %v322_v15 = vld [vmem:[%s444_s5 + $0x18] sm:$0xff]  ;;  %v321_v16 = vld [vmem:[%s444_s5 + $0x10] sm:$0xff]  ;;  %v327_v17 = vld [vmem:[%s441_s2] ss:$0 sm:$0xff] }
   0x7   :  { %v320_v23 = vld [vmem:[%s444_s5 + $0x8] sm:$0xff]  ;;  %v319_v24 = vld [vmem:[%s444_s5] sm:$0xff] }
   0x8   :  { %v328_v25 = vld [vmem:[%s443_s4] ss:$0 sm:$0xff] }
   0x9   :  { %244 = vmatmul.msk.bf16.vlgmr.msra.gmra.mxu0 %vm48_vm0, %v27_v4  ;;  %219 = vmatpush.bf16.msra.mxu2 %v325_v12  ;;  %v329_v31 = vld [vmem:[%s445_s6] ss:$0 sm:$0xff] }
   0xa   :  { %137 = vmatpush.bf16.msra.mxu1 %v316_v5 }
   0xd   :  { %220 = vmatpush.bf16.msra.mxu2 %v324_v13 }
   0xe   :  { %138 = vmatpush.bf16.msra.mxu1 %v315_v6 }
  0x11   :  { %221 = vmatpush.bf16.msra.mxu2 %v323_v14 }
  0x12   :  { %139 = vmatpush.bf16.msra.mxu1 %v314_v7 }
  0x15   :  { %222 = vmatpush.bf16.msra.mxu2 %v322_v15 }
  0x16   :  { %140 = vmatpush.bf16.msra.mxu1 %v313_v8 }
  0x19   :  { %223 = vmatpush.bf16.msra.mxu2 %v321_v16 }
  0x1a   :  { %141 = vmatpush.bf16.msra.mxu1 %v312_v9 }
  0x1d   :  { %224 = vmatpush.bf16.msra.mxu2 %v320_v23 }
  0x1e   :  { %142 = vmatpush.bf16.msra.mxu1 %v311_v10 }
  0x21   :  { %225 = vmatpush.bf16.msra.mxu2 %v319_v24 }
  0x86   :  { %v61_v18 = vpop.f32.mrf.mxu0 }
  0x87   :  { %v62_v19 = vadd.f32 %v327_v17, %v61_v18 }
  0x89   :  { %v65_v20 = vmax.f32 %v62_v19, 0.0 }
  0x8b   :  { %v66_v21 = vpack.c.bf16 %v65_v20, %v65_v20 }
  0x8d   :  { %143 = vmatmul.bf16.vlgmr.msra.gmra.mxu1 %v66_v21 }
  0x8e   :  { %v63_v22 = vpop.f32.mrf.mxu0 }
 0x10a   :  { %v144_v26 = vpop.f32.mrf.mxu1 }
 0x10b   :  { %v145_v27 = vadd.f32 %v328_v25, %v144_v26 }
 0x10d   :  { %v148_v28 = vmax.f32 %v145_v27, 0.0 }
 0x10f   :  { %v149_v29 = vpack.c.bf16 %v148_v28, %v148_v28 }
 0x111   :  { %226 = vmatmul.bf16.vlgmr.msra.gmra.mxu2 %v149_v29 }
 0x112   :  { %v146_v30 = vpop.f32.mrf.mxu1 }
 0x194   :  { %v227_v32 = vpop.f32.mrf.mxu2 }
 0x195   :  { %v228_v33 = vadd.f32 %v329_v31, %v227_v32 }
 0x197   :  { %231 = vst [vmem:[%s446_s7] sm:$0xff] %v228_v33 }
 0x19c   :  { %v229_v34 = vpop.f32.mrf.mxu2 }

</bundles_post_ra>
